<compile_context>
chip_gen: v5e
topology: v5e:2x2
jax: 0.10.0
libtpu: 0.0.40
codegen_flags: <defaults>
</compile_context>

<pallas_src>
import numpy as np
import jax
import jax.numpy as jnp
from jax.experimental import pallas as pl
from jax.experimental.pallas import tpu as pltpu


def _round_up(x, m):
    return (x + m - 1) // m * m


# ---------------------------------------------------------------------------
# Hypercomplex helpers (mirror hypercomplex_layers2.py forward semantics).
# TODO(synk): the original repo's get_comp_mat() body was not provided; a
# standard octonion-style signed component matrix (0-based indices) is used.
# The forward's literal `np.sign(ii)` semantics (np.sign(0) == 0, dropping the
# conv_0 term wherever the matrix entry is 0) are reproduced faithfully.
# ---------------------------------------------------------------------------
def get_comp_mat(num_components=8):
    assert num_components == 8
    return np.array([
        [0, -1, -2, -3, -4, -5, -6, -7],
        [1,  0, -3,  2, -5,  4,  7, -6],
        [2,  3,  0, -1, -6, -7,  4,  5],
        [3, -2,  1,  0, -7,  6, -5,  4],
        [4,  5,  6,  7,  0, -1, -2, -3],
        [5, -4,  7, -6,  1,  0,  3, -2],
        [6, -7, -4,  5,  2, -3,  0,  1],
        [7,  6, -5, -4,  3,  2, -1,  0],
    ], dtype=np.int64)


def make_params(key, in_channels, out_channels, kernel_size, num_components):
    """Deterministic synthetic parameters, one ConvTranspose2d per component."""
    in_per = in_channels // num_components
    out_per = out_channels // num_components
    k_w, k_b = jax.random.split(key)
    fan_in = in_per * kernel_size * kernel_size
    bound = 1.0 / np.sqrt(fan_in)
    # PyTorch ConvTranspose2d weight layout: (in_per, out_per, kH, kW)
    W_all = jax.random.uniform(
        k_w, (num_components, in_per, out_per, kernel_size, kernel_size),
        minval=-bound, maxval=bound, dtype=jnp.float32)
    b_all = jax.random.uniform(
        k_b, (num_components, out_per),
        minval=-bound, maxval=bound, dtype=jnp.float32)
    return W_all, b_all


def combine_weights(W_all, b_all, comp):
    """Traceable hypercomplex folding into one correlation weight / bias.

    Wbig[c*in_per+i, r*out_per+o] = sign(comp[r,c]) * W_{|comp[r,c]|}[i, o]
    bbig[r*out_per+o]            = sum_c sign(comp[r,c]) * b_{|comp[r,c]|}[o]

    Returns WT of shape (Cout, K*K*Cin) — spatially flipped (ConvTranspose
    stride=1/pad=0 == full correlation with the flipped kernel), contraction
    ordered (kh, kw, cin) to match the wrapper's patch ordering — plus the
    combined bias as (Cout, 1) f32.
    """
    nc, in_per, out_per, K, _ = W_all.shape
    Cin, Cout = nc * in_per, nc * out_per
    idx = np.abs(comp)                             # static host ints
    sgn = np.sign(comp).astype(np.float32)         # literal semantics: sign(0)==0
    # Wblocks[c, r] = sgn[r, c] * W_all[idx[r, c]]   (constant-index gather)
    Wblocks = sgn.T[:, :, None, None, None, None] * W_all[idx.T]
    Wbig = jnp.transpose(Wblocks, (0, 2, 1, 3, 4, 5)).reshape(Cin, Cout, K, K)
    bbig = (sgn[:, :, None] * b_all[idx]).sum(axis=1).reshape(Cout)
    Wflip = Wbig[:, :, ::-1, ::-1]                 # conv_transpose -> correlation
    WT = jnp.transpose(Wflip, (1, 2, 3, 0)).reshape(Cout, K * K * Cin)
    return WT.astype(jnp.bfloat16), bbig.reshape(Cout, 1).astype(jnp.float32)


# ---------------------------------------------------------------------------
# Pallas kernel: one batch element per grid step, one transposed MXU matmul.
#   w_ref: (Cout, KK_Cin)        bf16 combined/flipped weights (resident)
#   b_ref: (Cout, 1)             f32  combined bias            (resident)
#   p_ref: (1, KK_Cin, M_pad)    bf16 im2col patches^T for one image
#   o_ref: (1, Cout, M_pad)      bf16 lane-dense output (already NCHW order)
# ---------------------------------------------------------------------------
def _hyper_convT_kernel(w_ref, b_ref, p_ref, o_ref):
    acc = jnp.dot(w_ref[...], p_ref[0], preferred_element_type=jnp.float32)
    o_ref[0, :, :] = (acc + b_ref[...]).astype(o_ref.dtype)


@jax.jit
def hyper_transpose_conv(x_nchw, W_all, b_all):
    """HyperTransposeConv forward (kernel_size=3, stride=1, padding=0, bias=True)."""
    nc, in_per, out_per, K, _ = W_all.shape
    N, Cin, H, Wd = x_nchw.shape
    assert Cin == nc * in_per
    Cout = nc * out_per
    OH, OW = H + K - 1, Wd + K - 1
    KK_Cin = K * K * Cin
    M = OH * OW
    M_pad = _round_up(M, 128)           # spatial dim lives on the lane axis

    comp = get_comp_mat(nc)             # compile-time constant
    WT, b2d = combine_weights(W_all, b_all, comp)

    # --- im2col (transposed) in the wrapper: patches[n, (kh,kw,cin), oh*ow] --
    xb = x_nchw.astype(jnp.bfloat16)
    x_pad = jnp.pad(xb, ((0, 0), (0, 0), (K - 1, K - 1), (K - 1, K - 1)))
    taps = [x_pad[:, :, kh:kh + OH, kw:kw + OW].reshape(N, Cin, M)
            for kh in range(K) for kw in range(K)]          # each (N, Cin, M)
    patches = jnp.concatenate(taps, axis=1)                 # (N, KK_Cin, M)
    patches = jnp.pad(patches, ((0, 0), (0, 0), (0, M_pad - M)))

    out_pad = pl.pallas_call(
        _hyper_convT_kernel,
        out_shape=jax.ShapeDtypeStruct((N, Cout, M_pad), jnp.bfloat16),
        grid_spec=pltpu.PrefetchScalarGridSpec(
            num_scalar_prefetch=0,
            grid=(N,),
            in_specs=[
                pl.BlockSpec((Cout, KK_Cin), lambda n: (0, 0)),       # resident
                pl.BlockSpec((Cout, 1), lambda n: (0, 0)),            # resident
                pl.BlockSpec((1, KK_Cin, M_pad), lambda n: (n, 0, 0)),
            ],
            out_specs=pl.BlockSpec((1, Cout, M_pad), lambda n: (n, 0, 0)),
        ),
        compiler_params=pltpu.CompilerParams(dimension_semantics=("parallel",)),
    )(WT, b2d, patches)

    # Output is already (N, Cout, OH*OW) == NCHW — just slice off lane padding.
    return out_pad[:, :, :M].reshape(N, Cout, OH, OW)


# ---------------------------------------------------------------------------
# Pure-JAX reference (per-component lax convs), mirrors the PyTorch forward.
# ---------------------------------------------------------------------------
def reference_forward(x_nchw, W_all, b_all, comp):
    nc, in_per, out_per, K, _ = W_all.shape
    N, C, H, Wd = x_nchw.shape
    xs = [x_nchw[:, c * in_per:(c + 1) * in_per] for c in range(nc)]

    def convT(xc, w, b):
        # w: (in_per, out_per, K, K) — PyTorch ConvTranspose2d, stride=1, pad=0
        rhs = jnp.transpose(w, (1, 0, 2, 3))[:, :, ::-1, ::-1]   # OIHW, flipped
        y = jax.lax.conv_general_dilated(
            xc, rhs, window_strides=(1, 1),
            padding=[(K - 1, K - 1), (K - 1, K - 1)],
            dimension_numbers=('NCHW', 'OIHW', 'NCHW'),
            precision=jax.lax.Precision.HIGHEST)
        return y + b[None, :, None, None]

    ys = []
    for r in range(nc):
        y_r = jnp.zeros((N, out_per, H + K - 1, Wd + K - 1), jnp.float32)
        for c in range(nc):
            ii = int(comp[r, c])
            sign = float(np.sign(ii))
            idx = abs(ii)
            if sign != 0.0:
                y_r = y_r + sign * convT(xs[c], W_all[idx], b_all[idx])
        ys.append(y_r)
    return jnp.concatenate(ys, axis=1)


if __name__ == "__main__":
    num_components = 8
    in_channels, out_channels = 16, 32          # per-component: 2 -> 4
    kernel_size = 3
    N, H, Wd = 2, 16, 16

    key = jax.random.PRNGKey(0)
    k_param, k_x = jax.random.split(key)
    W_all, b_all = make_params(k_param, in_channels, out_channels,
                               kernel_size, num_components)
    x = jax.random.normal(k_x, (N, in_channels, H, Wd), dtype=jnp.float32)

    out = jax.block_until_ready(hyper_transpose_conv(x, W_all, b_all))

    comp = get_comp_mat(num_components)
    ref = jax.block_until_ready(reference_forward(x, W_all, b_all, comp))

    assert out.shape == (N, out_channels, H + kernel_size - 1,
                         Wd + kernel_size - 1), out.shape
    np.testing.assert_allclose(np.asarray(out.astype(jnp.float32)),
                               np.asarray(ref), rtol=3e-2, atol=3e-2)
    print("KERNEL_OK")
</pallas_src>

<mosaic_0001>
module attributes {stable_mosaic.version = 11 : i64} {
  func.func @_hyper_convT_kernel(%arg0: i32, %arg1: memref<32x144xbf16, #tpu.memory_space<vmem>>, %arg2: memref<32x1xf32, #tpu.memory_space<vmem>>, %arg3: memref<1x144x384xbf16, #tpu.memory_space<vmem>>, %arg4: memref<1x32x384xbf16, #tpu.memory_space<vmem>>) attributes {dimension_semantics = [#tpu.dimension_semantics<parallel>], iteration_bounds = array<i64: 2>, scalar_prefetch = 0 : i64, scratch_operands = 0 : i64, tpu.core_type = #tpu.core_type<tc>, window_params = [{pipeline_mode = #tpu.pipeline_mode<synchronous>, transform_indices = @transform_0, window_bounds = array<i64: 32, 144>}, {pipeline_mode = #tpu.pipeline_mode<synchronous>, transform_indices = @transform_1, window_bounds = array<i64: 32, 1>}, {transform_indices = @transform_2, window_bounds = array<i64: 1, 144, 384>}, {transform_indices = @transform_3, window_bounds = array<i64: 1, 32, 384>}]} {
    %c0 = arith.constant 0 : index
    %c0_0 = arith.constant 0 : index
    %0 = vector.load %arg1[%c0, %c0_0] : memref<32x144xbf16, #tpu.memory_space<vmem>>, vector<32x144xbf16>
    %c0_1 = arith.constant 0 : index
    %c0_2 = arith.constant 0 : index
    %c0_3 = arith.constant 0 : index
    %1 = vector.load %arg3[%c0_1, %c0_2, %c0_3] : memref<1x144x384xbf16, #tpu.memory_space<vmem>>, vector<1x144x384xbf16>
    %2 = vector.shape_cast %1 : vector<1x144x384xbf16> to vector<144x384xbf16>
    %cst = arith.constant dense<0.000000e+00> : vector<32x384xf32>
    %3 = tpu.matmul %0, %2, %cst {dimension_numbers = #tpu.dot_dimension_numbers<[1], [0], [0], [1], [0, 0, 1, 1], [], []>} : vector<32x144xbf16>, vector<144x384xbf16>, vector<32x384xf32> -> vector<32x384xf32>
    %c0_4 = arith.constant 0 : index
    %c0_5 = arith.constant 0 : index
    %4 = vector.load %arg2[%c0_4, %c0_5] : memref<32x1xf32, #tpu.memory_space<vmem>>, vector<32x1xf32>
    %5 = vector.broadcast %4 : vector<32x1xf32> to vector<32x384xf32>
    %6 = arith.addf %3, %5 : vector<32x384xf32>
    %7 = arith.truncf %6 : vector<32x384xf32> to vector<32x384xbf16>
    %c0_6 = arith.constant 0 : index
    %c0_7 = arith.constant 0 : index
    %c0_8 = arith.constant 0 : index
    %8 = vector.load %arg4[%c0_6, %c0_7, %c0_8] : memref<1x32x384xbf16, #tpu.memory_space<vmem>>, vector<1x32x384xbf16>
    %9 = vector.shape_cast %8 : vector<1x32x384xbf16> to vector<32x384xbf16>
    %10 = vector.shape_cast %7 : vector<32x384xbf16> to vector<1x32x384xbf16>
    tpu.vector_store %arg4[%c0_6, %c0_7, %c0_8], %10 {strides = array<i32>} : memref<1x32x384xbf16, #tpu.memory_space<vmem>>, vector<1x32x384xbf16>,
    return
  }
  func.func @transform_0(%arg0: i32) -> (i32, i32) {
    %c0_i32 = arith.constant 0 : i32
    %c0_i32_0 = arith.constant 0 : i32
    %c0_i32_1 = arith.constant 0 : i32
    return %c0_i32, %c0_i32_0 : i32, i32
  }
  func.func @transform_1(%arg0: i32) -> (i32, i32) {
    %c0_i32 = arith.constant 0 : i32
    %c0_i32_0 = arith.constant 0 : i32
    %c0_i32_1 = arith.constant 0 : i32
    return %c0_i32, %c0_i32_0 : i32, i32
  }
  func.func @transform_2(%arg0: i32) -> (i32, i32, i32) {
    %c0_i32 = arith.constant 0 : i32
    %c0_i32_0 = arith.constant 0 : i32
    %c0_i32_1 = arith.constant 0 : i32
    return %arg0, %c0_i32, %c0_i32_0 : i32, i32, i32
  }
  func.func @transform_3(%arg0: i32) -> (i32, i32, i32) {
    %c0_i32 = arith.constant 0 : i32
    %c0_i32_0 = arith.constant 0 : i32
    %c0_i32_1 = arith.constant 0 : i32
    return %arg0, %c0_i32, %c0_i32_0 : i32, i32, i32
  }
}

</mosaic_0001>

<bundles_post_ra>
// kernel: hyper_transpose_conv.1
= control target key start
LH: loop header
LB: loop body
LE: loop exit
PB: predicated region body
PF: predicated region fallthrough
CT: control target
= control target key end

     0   :  { %s802_s12 = smov 0   ;;  %s936_s0 = inlined_call_operand.vmem [shape: bf16[32,144], index: 0, kind: input, shape index: {}]   ;;  %s937_s1 = inlined_call_operand.vmem [shape: f32[32,1], index: 1, kind: input, shape index: {}]   ;;  %s938_s2 = inlined_call_operand.vmem [shape: bf16[2,144,384], index: 2, kind: input, shape index: {}]   ;;  %s939_s3 = inlined_call_operand.vmem [shape: bf16[2,32,384], index: 3, kind: output, shape index: {}]  }
   0x1 LB: > { %s590_s13 = sadd.s32 4294967295, %s779_s12   ;;  %p594_p0 = scmp.ge.s32.totalorder %s779_s12, 1  ;;  %s779_s12 = sphi %s802_s12, %s13_s12  }
   0x2   : > { %p137_p1 = scmp.lt.s32.totalorder %s779_s12, 3 }
   0x4   : > { %p138_p2 = pnand %p594_p0, %p137_p1 }
   0x5   : > { %p161_p3 = scmp.lt.s32.totalorder (!%p138_p2), %s590_s13, 1 }
   0x6   : > { %141 = sbr.rel (%p138_p2) target bundleno = 216 (0xd8), region = 32 }
   0xb   : > { %s941_s13 = smov (!%p161_p3, %s590_s13), 1  ;;  %v729_v0 = vld [vmem:[%s936_s0 + $0x4] sm:$0xf]  ;;  %v601_v1 = vld [vmem:[%s936_s0 + $0x8] sm:$0xf0]  ;;  %vm398_vm0 = vcmask 130048  }
   0xc   : > { %s760_s14 = smul.u32 216, %s941_s13  ;;  %v833_v15 = vor.u32 %v729_v0, %v601_v1  ;;  %v731_v52 = vld [vmem:[%s936_s0 + $0x14] sm:$0xf]  ;;  %v609_v54 = vld [vmem:[%s936_s0 + $0x18] sm:$0xf0]  ;;  %v212_v62 = vld [vmem:[%s937_s1] sm:$0xff] }
   0xd   : > { %v612_v63 = vor.u32 %v731_v52, %v609_v54  ;;  %v781_v1 = vmov 0  }
   0xe   : > { %s816_s17 = scalar_lea.vmem %s938_s2, %s760_s14  ;;  %771 = vset.pattern.permute.xlu0 %v781_v1  ;;  %772 = vset.pattern.permute.xlu1 %v781_v1 }
   0xf   : > { %v699_v2 = vld [vmem:[%s816_s17 + $0xa8] sm:$0xf]  ;;  %v755_v3 = vld [vmem:[%s816_s17 + $0xb0] sm:$0xf0]  ;;  %v711_v4 = vld [vmem:[%s816_s17 + $0xc0] sm:$0xf]  ;;  %218 = vperm.xlu0 %771, %v212_v62  }
  0x10   : > { %v700_v5 = vor.u32 %v755_v3, %v699_v2  ;;  %v758_v6 = vld [vmem:[%s816_s17 + $0xc8] sm:$0xf0]  ;;  %v701_v8 = vld [vmem:[%s816_s17 + $0xb4] sm:$0xf0]  ;;  %v757_v11 = vld [vmem:[%s816_s17 + $0xc4] sm:$0xf] }
  0x11   : > { %v754_v7 = vld [vmem:[%s816_s17 + $0xac] sm:$0xf]  ;;  %v712_v9 = vor.u32 %v758_v6, %v711_v4  ;;  %v713_v12 = vld [vmem:[%s816_s17 + $0xcc] sm:$0xf0]  ;;  %v719_v13 = vld [vmem:[%s816_s17 + $0xc8] sm:$0xf] }
  0x12   : > { %v704_v10 = vor.u32 %v754_v7, %v701_v8  ;;  %405 = vmatpush.bf16.msra.mxu0 %v700_v5  ;;  %v716_v14 = vor.u32 %v757_v11, %v713_v12  ;;  %v759_v16 = vld [vmem:[%s816_s17 + $0xd0] sm:$0xf0]  ;;  %v687_v17 = vld [vmem:[%s816_s17 + $0x90] sm:$0xf]  ;;  %v752_v18 = vld [vmem:[%s816_s17 + $0x98] sm:$0xf0] }
  0x13   : > { %431 = vmatpush.bf16.msra.mxu1 %v712_v9  ;;  %v720_v19 = vor.u32 %v759_v16, %v719_v13  ;;  %v688_v20 = vor.u32 %v752_v18, %v687_v17  ;;  %v751_v21 = vld [vmem:[%s816_s17 + $0x94] sm:$0xf]  ;;  %v689_v22 = vld [vmem:[%s816_s17 + $0x9c] sm:$0xf0]  ;;  %v707_v23 = vld [vmem:[%s816_s17 + $0xb0] sm:$0xf] }
  0x14   : > { %443 = vmatpush.bf16.msra.mxu2 %v704_v10  ;;  %469 = vmatpush.bf16.msra.mxu3 %v716_v14  ;;  %v692_v24 = vor.u32 %v751_v21, %v689_v22  ;;  %v756_v25 = vld [vmem:[%s816_s17 + $0xb8] sm:$0xf0]  ;;  %v675_v26 = vld [vmem:[%s816_s17 + $0x78] sm:$0xf]  ;;  %v749_v27 = vld [vmem:[%s816_s17 + $0x80] sm:$0xf0] }
  0x15   : > { %v708_v28 = vor.u32 %v756_v25, %v707_v23  ;;  %v748_v29 = vld [vmem:[%s816_s17 + $0x7c] sm:$0xf]  ;;  %v677_v30 = vld [vmem:[%s816_s17 + $0x84] sm:$0xf0]  ;;  %v695_v31 = vld [vmem:[%s816_s17 + $0x98] sm:$0xf]  ;;  %v676_v32 = vor.u32 %v749_v27, %v675_v26 }
  0x16   : > { %721 = vmatmul.msk.bf16.vlgmr.msra.gmra.mxu1 %vm398_vm0, %v833_v15  ;;  %406 = vmatpush.bf16.msra.mxu0 %v688_v20  ;;  %v753_v33 = vld [vmem:[%s816_s17 + $0xa0] sm:$0xf0]  ;;  %v680_v34 = vor.u32 %v748_v29, %v677_v30  ;;  %v663_v35 = vld [vmem:[%s816_s17 + $0x60] sm:$0xf]  ;;  %v746_v36 = vld [vmem:[%s816_s17 + $0x68] sm:$0xf0] }
  0x17   : > { %723 = vmatmul.msk.bf16.vlgmr.msra.gmra.mxu3 %vm398_vm0, %v833_v15  ;;  %481 = vmatpush.bf16.msrb.mxu1 %v708_v28  ;;  %v696_v37 = vor.u32 %v753_v33, %v695_v31  ;;  %v745_v38 = vld [vmem:[%s816_s17 + $0x64] sm:$0xf]  ;;  %v665_v39 = vld [vmem:[%s816_s17 + $0x6c] sm:$0xf0]  ;;  %v683_v40 = vld [vmem:[%s816_s17 + $0x80] sm:$0xf]  ;;  %v664_v42 = vor.u32 %v746_v36, %v663_v35 }
  0x18   : > { %507 = vmatpush.bf16.msrb.mxu3 %v720_v19  ;;  %444 = vmatpush.bf16.msra.mxu2 %v692_v24  ;;  %v750_v41 = vld [vmem:[%s816_s17 + $0x88] sm:$0xf0]  ;;  %v668_v43 = vor.u32 %v745_v38, %v665_v39  ;;  %v651_v44 = vld [vmem:[%s816_s17 + $0x48] sm:$0xf]  ;;  %v743_v45 = vld [vmem:[%s816_s17 + $0x50] sm:$0xf0] }
  0x19   : > { %v684_v46 = vor.u32 %v750_v41, %v683_v40  ;;  %v742_v47 = vld [vmem:[%s816_s17 + $0x4c] sm:$0xf]  ;;  %v653_v48 = vld [vmem:[%s816_s17 + $0x54] sm:$0xf0]  ;;  %v671_v49 = vld [vmem:[%s816_s17 + $0x68] sm:$0xf]  ;;  %v652_v51 = vor.u32 %v743_v45, %v651_v44 }
  0x1a   : > { %407 = vmatpush.bf16.msra.mxu0 %v676_v32  ;;  %v747_v50 = vld [vmem:[%s816_s17 + $0x70] sm:$0xf0]  ;;  %v656_v53 = vor.u32 %v742_v47, %v653_v48  ;;  %v639_v55 = vld [vmem:[%s816_s17 + $0x30] sm:$0xf]  ;;  %v740_v56 = vld [vmem:[%s816_s17 + $0x38] sm:$0xf0] }
  0x1b   : > { %482 = vmatpush.bf16.msrb.mxu1 %v696_v37  ;;  %v672_v57 = vor.u32 %v747_v50, %v671_v49  ;;  %v739_v58 = vld [vmem:[%s816_s17 + $0x34] sm:$0xf]  ;;  %v641_v59 = vld [vmem:[%s816_s17 + $0x3c] sm:$0xf0]  ;;  %v659_v60 = vld [vmem:[%s816_s17 + $0x50] sm:$0xf]  ;;  %v640_v0 = vor.u32 %v740_v56, %v639_v55 }
  0x1c   : > { %445 = vmatpush.bf16.msra.mxu2 %v680_v34  ;;  %v744_v61 = vld [vmem:[%s816_s17 + $0x58] sm:$0xf0]  ;;  %v644_v2 = vor.u32 %v739_v58, %v641_v59  ;;  %v627_v3 = vld [vmem:[%s816_s17 + $0x18] sm:$0xf]  ;;  %v737_v4 = vld [vmem:[%s816_s17 + $0x20] sm:$0xf0] }
  0x1d   : > { %v660_v5 = vor.u32 %v744_v61, %v659_v60  ;;  %v736_v6 = vld [vmem:[%s816_s17 + $0x1c] sm:$0xf]  ;;  %v629_v7 = vld [vmem:[%s816_s17 + $0x24] sm:$0xf0]  ;;  %v647_v8 = vld [vmem:[%s816_s17 + $0x38] sm:$0xf]  ;;  %v628_v10 = vor.u32 %v737_v4, %v627_v3 }
  0x1e   : > { %408 = vmatpush.bf16.msra.mxu0 %v664_v42  ;;  %v741_v9 = vld [vmem:[%s816_s17 + $0x40] sm:$0xf0]  ;;  %v632_v11 = vor.u32 %v736_v6, %v629_v7  ;;  %v615_v12 = vld [vmem:[%s816_s17] sm:$0xf]  ;;  %v734_v13 = vld [vmem:[%s816_s17 + $0x8] sm:$0xf0] }
  0x1f   : > { %483 = vmatpush.bf16.msrb.mxu1 %v684_v46  ;;  %v214_v14 = vld [vmem:[%s937_s1 + $0x10] sm:$0xff]  ;;  %v648_v16 = vor.u32 %v741_v9, %v647_v8  ;;  %v733_v17 = vld [vmem:[%s816_s17 + $0x4] sm:$0xf]  ;;  %v213_v19 = vld [vmem:[%s937_s1 + $0x8] sm:$0xff]  ;;  %v616_v22 = vor.u32 %v734_v13, %v615_v12 }
  0x20   : > { %446 = vmatpush.bf16.msra.mxu2 %v668_v43  ;;  %v617_v18 = vld [vmem:[%s816_s17 + $0xc] sm:$0xf0]  ;;  %228 = vperm.xlu1 %772, %v214_v14   ;;  %v635_v20 = vld [vmem:[%s816_s17 + $0x20] sm:$0xf]  ;;  %v738_v21 = vld [vmem:[%s816_s17 + $0x28] sm:$0xf0] }
  0x21   : > { %v599_v23 = vld [vmem:[%s936_s0] sm:$0xf]  ;;  %v730_v24 = vld [vmem:[%s936_s0 + $0x4] sm:$0xf0]  ;;  %v620_v25 = vor.u32 %v733_v17, %v617_v18  ;;  %223 = vperm.xlu0 %771, %v213_v19   ;;  %v636_v26 = vor.u32 %v738_v21, %v635_v20  ;;  %v735_v29 = vld [vmem:[%s816_s17 + $0x10] sm:$0xf0] }
  0x22   : > { %409 = vmatpush.bf16.msra.mxu0 %v652_v51  ;;  %v600_v27 = vor.u32 %v730_v24, %v599_v23  ;;  %v623_v28 = vld [vmem:[%s816_s17 + $0x8] sm:$0xf]  ;;  %v215_v30 = vld [vmem:[%s937_s1 + $0x18] sm:$0xff]  ;;  %v607_v32 = vld [vmem:[%s936_s0 + $0x10] sm:$0xf]  ;;  %s761_s17 = smul.u32 48, %s941_s13 }
  0x23   : > { %484 = vmatpush.bf16.msrb.mxu1 %v672_v57  ;;  %v624_v31 = vor.u32 %v735_v29, %v623_v28  ;;  %v732_v33 = vld [vmem:[%s936_s0 + $0x14] sm:$0xf0] }
  0x24   : > { %447 = vmatpush.bf16.msra.mxu2 %v656_v53  ;;  %v608_v34 = vor.u32 %v732_v33, %v607_v32  ;;  %s923_s20 = scalar_lea.vmem %s939_s3, %s761_s17 }
  0x26   : > { %722 = vmatmul.msk.bf16.gmra.mxu1 %vm398_vm0, %v612_v63  ;;  %410 = vmatpush.bf16.msra.mxu0 %v640_v0 }
  0x27   : > { %724 = vmatmul.msk.bf16.gmra.mxu3 %vm398_vm0, %v612_v63  ;;  %485 = vmatpush.bf16.msrb.mxu1 %v660_v5 }
  0x28   : > { %448 = vmatpush.bf16.msra.mxu2 %v644_v2  ;;  %233 = vperm.xlu1 %772, %v215_v30  }
  0x2a   : > { %411 = vmatpush.bf16.msra.mxu0 %v628_v10 }
  0x2b   : > { %486 = vmatpush.bf16.msrb.mxu1 %v648_v16 }
  0x2c   : > { %449 = vmatpush.bf16.msra.mxu2 %v632_v11 }
  0x2e   : > { %412 = vmatpush.bf16.msra.mxu0 %v616_v22 }
  0x2f   : > { %487 = vmatpush.bf16.msrb.mxu1 %v636_v26 }
  0x30   : > { %450 = vmatpush.bf16.msra.mxu2 %v620_v25 }
  0x31   : > { %413 = vmatmul.bf16.vlgmr.msra.gmra.mxu0 %v600_v27 }
  0x33   : > { %451 = vmatmul.bf16.vlgmr.msra.gmra.mxu2 %v600_v27  ;;  %488 = vmatpush.bf16.msrb.mxu1 %v624_v31 }
  0x36   : > { %489 = vmatmul.bf16.vlgmr.msrb.gmra.mxu1 %v600_v27 }
  0x37   : > { %725 = vmatmul.msk.bf16.vlgmr.msrb.gmra.mxu3 %vm398_vm0, %v833_v15 }
  0x41   : > { %418 = vmatmul.bf16.gmra.mxu0 %v608_v34 }
  0x43   : > { %456 = vmatmul.bf16.gmra.mxu2 %v608_v34 }
  0x46   : > { %494 = vmatmul.bf16.gmra.mxu1 %v608_v34 }
  0x47   : > { %726 = vmatmul.msk.bf16.gmra.mxu3 %vm398_vm0, %v612_v63 }
  0x81   : > { %v219_v42 = vpop.permute.xlu0 %218 }
  0x92   : > { %v229_v61 = vpop.permute.xlu1 %228 }
  0x93   : > { %v433_v35 = vpop.f32.mrf.mxu1  ;;  %v224_v52 = vpop.permute.xlu0 %223 }
  0x9a   : > { %v471_v36 = vpop.f32.mrf.mxu3  ;;  %v234_v13 = vpop.permute.xlu1 %233 }
  0x9b   : > { %v435_v37 = vpop.f32.mrf.mxu1 }
  0xa2   : > { %v473_v38 = vpop.f32.mrf.mxu3 }
  0xa3   : > { %v438_v15 = vpop.f32.mrf.mxu1 }
  0xaa   : > { %v476_v39 = vpop.f32.mrf.mxu3 }
  0xab   : > { %v440_v40 = vpop.f32.mrf.mxu1 }
  0xae   : > { %v414_v41 = vpop.f32.mrf.mxu0 }
  0xaf   : > { %v415_v44 = vadd.f32 %v414_v41, %v219_v42 }
  0xb1   : > { %v434_v50 = vadd.f32 %v433_v35, %v415_v44 }
  0xb2   : > { %v478_v43 = vpop.f32.mrf.mxu3 }
  0xb3   : > { %v490_v45 = vpop.f32.mrf.mxu1 }
  0xb4   : > { %v491_v49 = vadd.f32 %v490_v45, %v219_v42 }
  0xb6   : > { %v452_v46 = vpop.f32.mrf.mxu2  ;;  %v416_v48 = vpop.f32.mrf.mxu0 }
  0xb7   : > { %v453_v47 = vadd.f32 %v452_v46, %v219_v42  ;;  %v417_v56 = vadd.f32 %v416_v48, %v224_v52 }
  0xb9   : > { %v472_v51 = vadd.f32 %v471_v36, %v453_v47  ;;  %v436_v63 = vadd.f32 %v435_v37, %v417_v56 }
  0xba   : > { %v509_v54 = vpop.f32.mrf.mxu3 }
  0xbb   : > { %v519_v53 = vpack.c.bf16 %v472_v51, %v434_v50  ;;  %v510_v55 = vadd.f32 %v509_v54, %v491_v49  ;;  %v492_v57 = vpop.f32.mrf.mxu1 }
  0xbc   : > { %v493_v1 = vadd.f32 %v492_v57, %v224_v52 }
  0xbd   : > { %527 = vst [vmem:[%s923_s20] sm:$0xff] %v519_v53  ;;  %v520_v58 = vpack.c.bf16 %v510_v55, %v510_v55 }
  0xbe   : > { %v454_v59 = vpop.f32.mrf.mxu2  ;;  %v419_v62 = vpop.f32.mrf.mxu0 }
  0xbf   : > { %v455_v60 = vadd.f32 %v454_v59, %v224_v52  ;;  %528 = vst [vmem:[%s923_s20 + $0x8] sm:$0xf] %v520_v58  ;;  %v420_v5 = vadd.f32 %v419_v62, %v229_v61 }
  0xc1   : > { %v474_v0 = vadd.f32 %v473_v38, %v455_v60  ;;  %v439_v11 = vadd.f32 %v438_v15, %v420_v5 }
  0xc2   : > { %v511_v3 = vpop.f32.mrf.mxu3 }
  0xc3   : > { %v521_v2 = vpack.c.bf16 %v474_v0, %v436_v63  ;;  %v512_v4 = vadd.f32 %v511_v3, %v493_v1  ;;  %v495_v6 = vpop.f32.mrf.mxu1 }
  0xc4   : > { %v496_v10 = vadd.f32 %v495_v6, %v229_v61 }
  0xc5   : > { %529 = vst [vmem:[%s923_s20 + $0xc] sm:$0xff] %v521_v2  ;;  %v522_v7 = vpack.c.bf16 %v512_v4, %v512_v4 }
  0xc6   : > { %v457_v8 = vpop.f32.mrf.mxu2  ;;  %v421_v14 = vpop.f32.mrf.mxu0 }
  0xc7   : > { %v458_v9 = vadd.f32 %v457_v8, %v229_v61  ;;  %530 = vst [vmem:[%s923_s20 + $0x14] sm:$0xf] %v522_v7  ;;  %v422_v19 = vadd.f32 %v421_v14, %v234_v13 }
  0xc9   : > { %v477_v12 = vadd.f32 %v476_v39, %v458_v9  ;;  %v441_v24 = vadd.f32 %v440_v40, %v422_v19 }
  0xca   : > { %v514_v17 = vpop.f32.mrf.mxu3 }
  0xcb   : > { %v523_v16 = vpack.c.bf16 %v477_v12, %v439_v11  ;;  %v515_v18 = vadd.f32 %v514_v17, %v496_v10  ;;  %v497_v22 = vpop.f32.mrf.mxu1 }
  0xcc   : > { %v498_v26 = vadd.f32 %v497_v22, %v234_v13 }
  0xcd   : > { %531 = vst [vmem:[%s923_s20 + $0x18] sm:$0xff] %v523_v16  ;;  %v524_v20 = vpack.c.bf16 %v515_v18, %v515_v18 }
  0xce   : > { %v459_v21 = vpop.f32.mrf.mxu2 }
  0xcf   : > { %v460_v23 = vadd.f32 %v459_v21, %v234_v13  ;;  %532 = vst [vmem:[%s923_s20 + $0x20] sm:$0xf] %v524_v20 }
  0xd1   : > { %v479_v25 = vadd.f32 %v478_v43, %v460_v23 }
  0xd2   : > { %v516_v28 = vpop.f32.mrf.mxu3 }
  0xd3   : > { %v525_v27 = vpack.c.bf16 %v479_v25, %v441_v24  ;;  %v517_v29 = vadd.f32 %v516_v28, %v498_v26 }
  0xd5   : > { %533 = vst [vmem:[%s923_s20 + $0x24] sm:$0xff] %v525_v27  ;;  %v526_v30 = vpack.c.bf16 %v517_v29, %v517_v29 }
  0xd7   : > { %534 = vst [vmem:[%s923_s20 + $0x2c] sm:$0xf] %v526_v30 }
  0xd8 PF: > { %s13_s12 = sadd.s32 1, %s779_s12  }
  0xd9   : > { %p10_p4 = scmp.ge.s32.totalorder %s13_s12, 4  }
  0xdb   :  { %12 = sbr.rel (!%p10_p4) target bundleno = 1 (0x1), region = 62 }

</bundles_post_ra>
